<compile_context>
chip_gen: v5e
topology: v5e:2x2
jax: 0.10.0
libtpu: 0.0.40
codegen_flags: <defaults>
</compile_context>

<pallas_src>
import math
import functools

import jax
import jax.numpy as jnp
from jax.experimental import pallas as pl
from jax.experimental.pallas import tpu as pltpu


# ----------------------------- kernel -------------------------------------- #

def _cross_attn_kernel(x_ref, y_ref,
                       wq_ref, bq_ref,
                       wkv_ref, bkv_ref,
                       wo_ref, bo_ref,
                       o_ref,
                       kT_ref, v_ref, concat_ref,
                       *, n_heads, d_head, d_embed, feed_dtype):
    # ---- hoisted once per batch: fused K/V projection + single K transpose --
    @pl.when(pl.program_id(1) == 0)
    def _():
        y = y_ref[0]                                                # (Lkv, Dc)
        kv = (jnp.dot(y, wkv_ref[...], preferred_element_type=jnp.float32)
              + bkv_ref[...])                                       # (Lkv, 2D), f32 acc
        k = kv[:, :d_embed].astype(feed_dtype)                      # cast BEFORE .T
        v_ref[...] = kv[:, d_embed:].astype(feed_dtype)             # (Lkv, D)
        kT_ref[...] = k.T                                           # (D, Lkv)

    # ---- Q projection (1/sqrt(d_head) pre-folded into wq/bq) ----------------
    x = x_ref[0]                                                    # (TQ, D)
    q = (jnp.dot(x, wq_ref[...], preferred_element_type=jnp.float32)
         + bq_ref[...]).astype(feed_dtype)                          # (TQ, D)

    # ---- per-head attention, staged into the (TQ, D) concat scratch ---------
    for h in range(n_heads):                                        # static -> unrolled
        lo, hi = h * d_head, (h + 1) * d_head
        s = jnp.dot(q[:, lo:hi], kT_ref[lo:hi, :],
                    preferred_element_type=jnp.float32)             # (TQ, Lkv)
        s = s - jnp.max(s, axis=-1, keepdims=True)
        e = jnp.exp(s)
        p = (e * pl.reciprocal(jnp.sum(e, axis=-1, keepdims=True),
                               approx=True)).astype(feed_dtype)     # EUP recip
        concat_ref[:, lo:hi] = jnp.dot(
            p, v_ref[:, lo:hi],
            preferred_element_type=jnp.float32).astype(feed_dtype)  # (TQ, dh)

    # ---- single wide output projection (contraction K = d_embed) ------------
    out = (jnp.dot(concat_ref[...], wo_ref[...],
                   preferred_element_type=jnp.float32) + bo_ref[...])
    o_ref[0] = out.astype(o_ref.dtype)


# ----------------------------- wrapper -------------------------------------- #

def prepare_params(params, n_heads, dtype=None):
    """One-time re-layout of nn.Linear params.

    Transposes weights to (in, out), fuses K|V into one (Dc, 2D) matrix, folds
    1/sqrt(d_head) into Wq / bq.  Do this ONCE, not per forward call.
    For bf16 models pass dtype=jnp.bfloat16 so the MXU sees bf16 weights.
    """
    d_embed = params["wq"].shape[0]
    d_head = d_embed // n_heads
    scale = 1.0 / math.sqrt(d_head)
    prep = dict(
        wq_t=params["wq"].T * scale,
        bq=(params["bq"] * scale).reshape(1, d_embed),
        wkv_t=jnp.concatenate([params["wk"].T, params["wv"].T], axis=1),
        bkv=jnp.concatenate([params["bk"], params["bv"]]).reshape(1, 2 * d_embed),
        wo_t=params["wo"].T,
        bo=params["bo"].reshape(1, d_embed),
    )
    if dtype is not None:
        prep = {k: v.astype(dtype) for k, v in prep.items()}
    return prep


def _choose_q_tile(lq, d_embed, d_cross, max_q_tile=None):
    """Pick Q tile size; returns (TQ, padded Lq).  Never an unbounded tile."""
    if max_q_tile is None:
        # Tighter cap for large models: bounds VMEM on v7x (64 MiB physical).
        max_q_tile = 256 if max(d_embed, d_cross) >= 1024 else 512
    if lq <= max_q_tile:
        return lq, lq                           # single full tile
    for t in range(max_q_tile, 7, -1):          # divisor that is a sublane multiple
        if t % 8 == 0 and lq % t == 0:
            return t, lq
    tq = max(max_q_tile - (max_q_tile % 8), 8)  # no nice divisor: pad Lq instead
    lq_pad = ((lq + tq - 1) // tq) * tq
    return tq, lq_pad


def _vmem_limit_bytes(tq, lkv, d, dc, itemsize):
    weights = (2 * d * d + dc * 2 * d + 4 * d) * itemsize      # single-buffered
    io = 2 * (tq * d + lkv * dc + tq * d) * itemsize           # double-buffered x/y/out
    scratch = (2 * lkv * d + tq * d) * itemsize                # kT, v, concat
    f32_tmp = (2 * tq * d + tq * lkv + 2 * lkv * d) * 4        # rough live f32 temps
    est = weights + io + scratch + f32_tmp
    return int(min(max(2 * est, 16 << 20), 64 << 20))


def cross_attention(x, y, prep, n_heads, max_q_tile=None, interpret=False):
    B, Lq, D = x.shape
    _, Lkv, Dc = y.shape
    d_head = D // n_heads

    TQ, Lq_pad = _choose_q_tile(Lq, D, Dc, max_q_tile)
    if Lq_pad != Lq:
        x = jnp.pad(x, ((0, 0), (0, Lq_pad - Lq), (0, 0)))

    kernel = functools.partial(_cross_attn_kernel, n_heads=n_heads,
                               d_head=d_head, d_embed=D, feed_dtype=x.dtype)

    def fixed(shape):
        # Constant-index weight/bias blocks: single-buffered (no re-DMA, half VMEM).
        return pl.BlockSpec(shape, lambda b, qi: (0,) * len(shape),
                            pipeline_mode=pl.Buffered(1))

    vmem_limit = _vmem_limit_bytes(TQ, Lkv, D, Dc, jnp.dtype(x.dtype).itemsize)

    out = pl.pallas_call(
        kernel,
        out_shape=jax.ShapeDtypeStruct((B, Lq_pad, D), x.dtype),
        grid=(B, Lq_pad // TQ),
        in_specs=[
            pl.BlockSpec((1, TQ, D), lambda b, qi: (b, qi, 0)),      # x Q tile
            pl.BlockSpec((1, Lkv, Dc), lambda b, qi: (b, 0, 0)),     # y (full KV)
            fixed((D, D)), fixed((1, D)),                            # q_proj (scale folded)
            fixed((Dc, 2 * D)), fixed((1, 2 * D)),                   # fused k/v proj
            fixed((D, D)), fixed((1, D)),                            # out_proj
        ],
        out_specs=pl.BlockSpec((1, TQ, D), lambda b, qi: (b, qi, 0)),
        scratch_shapes=[
            pltpu.VMEM((D, Lkv), x.dtype),     # kT  — per-batch carry
            pltpu.VMEM((Lkv, D), x.dtype),     # v   — per-batch carry
            pltpu.VMEM((TQ, D), x.dtype),      # per-head concat buffer
        ],
        compiler_params=pltpu.CompilerParams(
            dimension_semantics=("parallel", "arbitrary"),
            vmem_limit_bytes=vmem_limit),
        interpret=interpret,
    )(x, y, prep["wq_t"], prep["bq"], prep["wkv_t"], prep["bkv"],
      prep["wo_t"], prep["bo"])

    if Lq_pad != Lq:
        out = out[:, :Lq, :]
    return out


# ----------------------------- reference / test ----------------------------- #

def cross_attention_ref(x, y, params, n_heads):
    """Pure-JAX reference mirroring the PyTorch forward."""
    B, Lq, D = x.shape
    Lkv = y.shape[1]
    dh = D // n_heads
    q = x @ params["wq"].T + params["bq"]
    k = y @ params["wk"].T + params["bk"]
    v = y @ params["wv"].T + params["bv"]
    q = q.reshape(B, Lq, n_heads, dh).transpose(0, 2, 1, 3)
    k = k.reshape(B, Lkv, n_heads, dh).transpose(0, 2, 1, 3)
    v = v.reshape(B, Lkv, n_heads, dh).transpose(0, 2, 1, 3)
    w = jnp.einsum("bhqd,bhkd->bhqk", q, k) / math.sqrt(dh)
    w = jax.nn.softmax(w, axis=-1)
    o = jnp.einsum("bhqk,bhkd->bhqd", w, v)
    o = o.transpose(0, 2, 1, 3).reshape(B, Lq, D)
    return o @ params["wo"].T + params["bo"]


def init_params(key, d_embed, d_cross):
    ks = jax.random.split(key, 8)

    def lin(kw, kb, fan_in, fan_out):
        bound = 1.0 / math.sqrt(fan_in)
        w = jax.random.uniform(kw, (fan_out, fan_in), jnp.float32, -bound, bound)
        b = jax.random.uniform(kb, (fan_out,), jnp.float32, -bound, bound)
        return w, b

    wq, bq = lin(ks[0], ks[1], d_embed, d_embed)
    wk, bk = lin(ks[2], ks[3], d_cross, d_embed)
    wv, bv = lin(ks[4], ks[5], d_cross, d_embed)
    wo, bo = lin(ks[6], ks[7], d_embed, d_embed)
    return dict(wq=wq, bq=bq, wk=wk, bk=bk, wv=wv, bv=bv, wo=wo, bo=bo)


if __name__ == "__main__":
    # small shapes: batch=2, seq_q=16, seq_kv=8, d_embed=32, d_cross=24, heads=4
    B, Lq, Lkv = 2, 16, 8
    n_heads, d_embed, d_cross = 4, 32, 24

    key = jax.random.PRNGKey(0)
    kx, ky, kp = jax.random.split(key, 3)
    x = jax.random.normal(kx, (B, Lq, d_embed), jnp.float32)
    y = jax.random.normal(ky, (B, Lkv, d_cross), jnp.float32)
    params = init_params(kp, d_embed, d_cross)

    prep = prepare_params(params, n_heads)                 # one-time param prep
    attn = jax.jit(functools.partial(cross_attention, n_heads=n_heads))

    out = attn(x, y, prep)
    out = jax.block_until_ready(out)

    ref = cross_attention_ref(x, y, params, n_heads)
    assert out.shape == (B, Lq, d_embed)
    # tolerance accounts for the approx (EUP) softmax reciprocal (~1e-3 rel)
    assert jnp.allclose(out, ref, atol=2e-3, rtol=2e-3), "mismatch vs reference"

    print("KERNEL_OK")
</pallas_src>

<mosaic_0001>
module attributes {stable_mosaic.version = 11 : i64} {
  func.func @_cross_attn_kernel(%arg0: i32, %arg1: i32, %arg2: memref<1x16x32xf32, #tpu.memory_space<vmem>>, %arg3: memref<1x8x24xf32, #tpu.memory_space<vmem>>, %arg4: memref<32x32xf32, #tpu.memory_space<vmem>>, %arg5: memref<1x32xf32, #tpu.memory_space<vmem>>, %arg6: memref<24x64xf32, #tpu.memory_space<vmem>>, %arg7: memref<1x64xf32, #tpu.memory_space<vmem>>, %arg8: memref<32x32xf32, #tpu.memory_space<vmem>>, %arg9: memref<1x32xf32, #tpu.memory_space<vmem>>, %arg10: memref<1x16x32xf32, #tpu.memory_space<vmem>>, %arg11: memref<32x8xf32, #tpu.memory_space<vmem>>, %arg12: memref<8x32xf32, #tpu.memory_space<vmem>>, %arg13: memref<16x32xf32, #tpu.memory_space<vmem>>) attributes {dimension_semantics = [#tpu.dimension_semantics<parallel>, #tpu.dimension_semantics<arbitrary>], iteration_bounds = array<i64: 2, 1>, scalar_prefetch = 0 : i64, scratch_operands = 3 : i64, tpu.core_type = #tpu.core_type<tc>, window_params = [{transform_indices = @transform_0, window_bounds = array<i64: 1, 16, 32>}, {transform_indices = @transform_1, window_bounds = array<i64: 1, 8, 24>}, {pipeline_mode = #tpu.pipeline_mode<synchronous>, transform_indices = @transform_2, window_bounds = array<i64: 32, 32>}, {pipeline_mode = #tpu.pipeline_mode<synchronous>, transform_indices = @transform_3, window_bounds = array<i64: 1, 32>}, {pipeline_mode = #tpu.pipeline_mode<synchronous>, transform_indices = @transform_4, window_bounds = array<i64: 24, 64>}, {pipeline_mode = #tpu.pipeline_mode<synchronous>, transform_indices = @transform_5, window_bounds = array<i64: 1, 64>}, {pipeline_mode = #tpu.pipeline_mode<synchronous>, transform_indices = @transform_6, window_bounds = array<i64: 32, 32>}, {pipeline_mode = #tpu.pipeline_mode<synchronous>, transform_indices = @transform_7, window_bounds = array<i64: 1, 32>}, {transform_indices = @transform_8, window_bounds = array<i64: 1, 16, 32>}]} {
    %c0_i32 = arith.constant 0 : i32
    %0 = arith.cmpi eq, %arg1, %c0_i32 : i32
    %1 = arith.extui %0 : i1 to i32
    %c0_i32_0 = arith.constant 0 : i32
    %2 = arith.cmpi ne, %1, %c0_i32_0 : i32
    scf.if %2 {
      %c0_54 = arith.constant 0 : index
      %c0_55 = arith.constant 0 : index
      %c0_56 = arith.constant 0 : index
      %83 = vector.load %arg3[%c0_54, %c0_55, %c0_56] : memref<1x8x24xf32, #tpu.memory_space<vmem>>, vector<1x8x24xf32>
      %84 = vector.shape_cast %83 : vector<1x8x24xf32> to vector<8x24xf32>
      %c0_57 = arith.constant 0 : index
      %c0_58 = arith.constant 0 : index
      %85 = vector.load %arg6[%c0_57, %c0_58] : memref<24x64xf32, #tpu.memory_space<vmem>>, vector<24x64xf32>
      %cst_59 = arith.constant dense<0.000000e+00> : vector<8x64xf32>
      %86 = tpu.matmul %84, %85, %cst_59 {dimension_numbers = #tpu.dot_dimension_numbers<[1], [0], [0], [1], [0, 0, 1, 1], [], []>} : vector<8x24xf32>, vector<24x64xf32>, vector<8x64xf32> -> vector<8x64xf32>
      %c0_60 = arith.constant 0 : index
      %c0_61 = arith.constant 0 : index
      %87 = vector.load %arg7[%c0_60, %c0_61] : memref<1x64xf32, #tpu.memory_space<vmem>>, vector<1x64xf32>
      %88 = vector.broadcast %87 : vector<1x64xf32> to vector<8x64xf32>
      %89 = arith.addf %86, %88 : vector<8x64xf32>
      %90 = vector.extract_strided_slice %89 {offsets = [0, 0], sizes = [8, 32], strides = [1, 1]} : vector<8x64xf32> to vector<8x32xf32>
      %91 = vector.extract_strided_slice %89 {offsets = [0, 32], sizes = [8, 32], strides = [1, 1]} : vector<8x64xf32> to vector<8x32xf32>
      %c0_62 = arith.constant 0 : index
      %c0_63 = arith.constant 0 : index
      %92 = vector.load %arg12[%c0_62, %c0_63] : memref<8x32xf32, #tpu.memory_space<vmem>>, vector<8x32xf32>
      tpu.vector_store %arg12[%c0_62, %c0_63], %91 {strides = array<i32>} : memref<8x32xf32, #tpu.memory_space<vmem>>, vector<8x32xf32>,
      %93 = tpu.transpose %90, [1, 0] : vector<8x32xf32> -> vector<32x8xf32>
      %c0_64 = arith.constant 0 : index
      %c0_65 = arith.constant 0 : index
      %94 = vector.load %arg11[%c0_64, %c0_65] : memref<32x8xf32, #tpu.memory_space<vmem>>, vector<32x8xf32>
      tpu.vector_store %arg11[%c0_64, %c0_65], %93 {strides = array<i32>} : memref<32x8xf32, #tpu.memory_space<vmem>>, vector<32x8xf32>,
    } else {
    }
    %c0 = arith.constant 0 : index
    %c0_1 = arith.constant 0 : index
    %c0_2 = arith.constant 0 : index
    %3 = vector.load %arg2[%c0, %c0_1, %c0_2] : memref<1x16x32xf32, #tpu.memory_space<vmem>>, vector<1x16x32xf32>
    %4 = vector.shape_cast %3 : vector<1x16x32xf32> to vector<16x32xf32>
    %c0_3 = arith.constant 0 : index
    %c0_4 = arith.constant 0 : index
    %5 = vector.load %arg4[%c0_3, %c0_4] : memref<32x32xf32, #tpu.memory_space<vmem>>, vector<32x32xf32>
    %cst = arith.constant dense<0.000000e+00> : vector<16x32xf32>
    %6 = tpu.matmul %4, %5, %cst {dimension_numbers = #tpu.dot_dimension_numbers<[1], [0], [0], [1], [0, 0, 1, 1], [], []>} : vector<16x32xf32>, vector<32x32xf32>, vector<16x32xf32> -> vector<16x32xf32>
    %c0_5 = arith.constant 0 : index
    %c0_6 = arith.constant 0 : index
    %7 = vector.load %arg5[%c0_5, %c0_6] : memref<1x32xf32, #tpu.memory_space<vmem>>, vector<1x32xf32>
    %8 = vector.broadcast %7 : vector<1x32xf32> to vector<16x32xf32>
    %9 = arith.addf %6, %8 : vector<16x32xf32>
    %10 = vector.extract_strided_slice %9 {offsets = [0, 0], sizes = [16, 8], strides = [1, 1]} : vector<16x32xf32> to vector<16x8xf32>
    %c0_7 = arith.constant 0 : index
    %c0_8 = arith.constant 0 : index
    %11 = vector.load %arg11[%c0_7, %c0_8] : memref<32x8xf32, #tpu.memory_space<vmem>>, vector<8x8xf32>
    %cst_9 = arith.constant dense<0.000000e+00> : vector<16x8xf32>
    %12 = tpu.matmul %10, %11, %cst_9 {dimension_numbers = #tpu.dot_dimension_numbers<[1], [0], [0], [1], [0, 0, 1, 1], [], []>} : vector<16x8xf32>, vector<8x8xf32>, vector<16x8xf32> -> vector<16x8xf32>
    %cst_10 = arith.constant dense<0xFF800000> : vector<16xf32>
    %13 = vector.multi_reduction <maximumf>, %12, %cst_10 [1] : vector<16x8xf32> to vector<16xf32>
    %14 = vector.shape_cast %13 : vector<16xf32> to vector<16x1xf32>
    %15 = vector.broadcast %14 : vector<16x1xf32> to vector<16x8xf32>
    %16 = arith.subf %12, %15 : vector<16x8xf32>
    %17 = math.exp %16 : vector<16x8xf32>
    %cst_11 = arith.constant dense<0.000000e+00> : vector<16xf32>
    %18 = vector.multi_reduction <add>, %17, %cst_11 [1] : vector<16x8xf32> to vector<16xf32>
    %19 = vector.shape_cast %18 : vector<16xf32> to vector<16x1xf32>
    %20 = tpu.reciprocal %19 {approx = true} : vector<16x1xf32> -> vector<16x1xf32>
    %21 = vector.broadcast %20 : vector<16x1xf32> to vector<16x8xf32>
    %22 = arith.mulf %17, %21 : vector<16x8xf32>
    %c0_12 = arith.constant 0 : index
    %c0_13 = arith.constant 0 : index
    %23 = vector.load %arg12[%c0_12, %c0_13] : memref<8x32xf32, #tpu.memory_space<vmem>>, vector<8x8xf32>
    %cst_14 = arith.constant dense<0.000000e+00> : vector<16x8xf32>
    %24 = tpu.matmul %22, %23, %cst_14 {dimension_numbers = #tpu.dot_dimension_numbers<[1], [0], [0], [1], [0, 0, 1, 1], [], []>} : vector<16x8xf32>, vector<8x8xf32>, vector<16x8xf32> -> vector<16x8xf32>
    %c0_15 = arith.constant 0 : index
    %c0_16 = arith.constant 0 : index
    %25 = vector.load %arg13[%c0_15, %c0_16] : memref<16x32xf32, #tpu.memory_space<vmem>>, vector<16x8xf32>
    tpu.vector_store %arg13[%c0_15, %c0_16], %24 {strides = array<i32>} : memref<16x32xf32, #tpu.memory_space<vmem>>, vector<16x8xf32>,
    %26 = vector.extract_strided_slice %9 {offsets = [0, 8], sizes = [16, 8], strides = [1, 1]} : vector<16x32xf32> to vector<16x8xf32>
    %c8 = arith.constant 8 : index
    %c0_17 = arith.constant 0 : index
    %27 = vector.load %arg11[%c8, %c0_17] : memref<32x8xf32, #tpu.memory_space<vmem>>, vector<8x8xf32>
    %cst_18 = arith.constant dense<0.000000e+00> : vector<16x8xf32>
    %28 = tpu.matmul %26, %27, %cst_18 {dimension_numbers = #tpu.dot_dimension_numbers<[1], [0], [0], [1], [0, 0, 1, 1], [], []>} : vector<16x8xf32>, vector<8x8xf32>, vector<16x8xf32> -> vector<16x8xf32>
    %cst_19 = arith.constant dense<0xFF800000> : vector<16xf32>
    %29 = vector.multi_reduction <maximumf>, %28, %cst_19 [1] : vector<16x8xf32> to vector<16xf32>
    %30 = vector.shape_cast %29 : vector<16xf32> to vector<16x1xf32>
    %31 = vector.broadcast %30 : vector<16x1xf32> to vector<16x8xf32>
    %32 = arith.subf %28, %31 : vector<16x8xf32>
    %33 = math.exp %32 : vector<16x8xf32>
    %cst_20 = arith.constant dense<0.000000e+00> : vector<16xf32>
    %34 = vector.multi_reduction <add>, %33, %cst_20 [1] : vector<16x8xf32> to vector<16xf32>
    %35 = vector.shape_cast %34 : vector<16xf32> to vector<16x1xf32>
    %36 = tpu.reciprocal %35 {approx = true} : vector<16x1xf32> -> vector<16x1xf32>
    %37 = vector.broadcast %36 : vector<16x1xf32> to vector<16x8xf32>
    %38 = arith.mulf %33, %37 : vector<16x8xf32>
    %c0_21 = arith.constant 0 : index
    %c8_22 = arith.constant 8 : index
    %39 = vector.load %arg12[%c0_21, %c8_22] : memref<8x32xf32, #tpu.memory_space<vmem>>, vector<8x8xf32>
    %cst_23 = arith.constant dense<0.000000e+00> : vector<16x8xf32>
    %40 = tpu.matmul %38, %39, %cst_23 {dimension_numbers = #tpu.dot_dimension_numbers<[1], [0], [0], [1], [0, 0, 1, 1], [], []>} : vector<16x8xf32>, vector<8x8xf32>, vector<16x8xf32> -> vector<16x8xf32>
    %c0_24 = arith.constant 0 : index
    %c8_25 = arith.constant 8 : index
    %41 = vector.load %arg13[%c0_24, %c8_25] : memref<16x32xf32, #tpu.memory_space<vmem>>, vector<16x8xf32>
    tpu.vector_store %arg13[%c0_24, %c8_25], %40 {strides = array<i32>} : memref<16x32xf32, #tpu.memory_space<vmem>>, vector<16x8xf32>,
    %42 = vector.extract_strided_slice %9 {offsets = [0, 16], sizes = [16, 8], strides = [1, 1]} : vector<16x32xf32> to vector<16x8xf32>
    %c16 = arith.constant 16 : index
    %c0_26 = arith.constant 0 : index
    %43 = vector.load %arg11[%c16, %c0_26] : memref<32x8xf32, #tpu.memory_space<vmem>>, vector<8x8xf32>
    %cst_27 = arith.constant dense<0.000000e+00> : vector<16x8xf32>
    %44 = tpu.matmul %42, %43, %cst_27 {dimension_numbers = #tpu.dot_dimension_numbers<[1], [0], [0], [1], [0, 0, 1, 1], [], []>} : vector<16x8xf32>, vector<8x8xf32>, vector<16x8xf32> -> vector<16x8xf32>
    %cst_28 = arith.constant dense<0xFF800000> : vector<16xf32>
    %45 = vector.multi_reduction <maximumf>, %44, %cst_28 [1] : vector<16x8xf32> to vector<16xf32>
    %46 = vector.shape_cast %45 : vector<16xf32> to vector<16x1xf32>
    %47 = vector.broadcast %46 : vector<16x1xf32> to vector<16x8xf32>
    %48 = arith.subf %44, %47 : vector<16x8xf32>
    %49 = math.exp %48 : vector<16x8xf32>
    %cst_29 = arith.constant dense<0.000000e+00> : vector<16xf32>
    %50 = vector.multi_reduction <add>, %49, %cst_29 [1] : vector<16x8xf32> to vector<16xf32>
    %51 = vector.shape_cast %50 : vector<16xf32> to vector<16x1xf32>
    %52 = tpu.reciprocal %51 {approx = true} : vector<16x1xf32> -> vector<16x1xf32>
    %53 = vector.broadcast %52 : vector<16x1xf32> to vector<16x8xf32>
    %54 = arith.mulf %49, %53 : vector<16x8xf32>
    %c0_30 = arith.constant 0 : index
    %c16_31 = arith.constant 16 : index
    %55 = vector.load %arg12[%c0_30, %c16_31] : memref<8x32xf32, #tpu.memory_space<vmem>>, vector<8x8xf32>
    %cst_32 = arith.constant dense<0.000000e+00> : vector<16x8xf32>
    %56 = tpu.matmul %54, %55, %cst_32 {dimension_numbers = #tpu.dot_dimension_numbers<[1], [0], [0], [1], [0, 0, 1, 1], [], []>} : vector<16x8xf32>, vector<8x8xf32>, vector<16x8xf32> -> vector<16x8xf32>
    %c0_33 = arith.constant 0 : index
    %c16_34 = arith.constant 16 : index
    %57 = vector.load %arg13[%c0_33, %c16_34] : memref<16x32xf32, #tpu.memory_space<vmem>>, vector<16x8xf32>
    tpu.vector_store %arg13[%c0_33, %c16_34], %56 {strides = array<i32>} : memref<16x32xf32, #tpu.memory_space<vmem>>, vector<16x8xf32>,
    %58 = vector.extract_strided_slice %9 {offsets = [0, 24], sizes = [16, 8], strides = [1, 1]} : vector<16x32xf32> to vector<16x8xf32>
    %c24 = arith.constant 24 : index
    %c0_35 = arith.constant 0 : index
    %59 = vector.load %arg11[%c24, %c0_35] : memref<32x8xf32, #tpu.memory_space<vmem>>, vector<8x8xf32>
    %cst_36 = arith.constant dense<0.000000e+00> : vector<16x8xf32>
    %60 = tpu.matmul %58, %59, %cst_36 {dimension_numbers = #tpu.dot_dimension_numbers<[1], [0], [0], [1], [0, 0, 1, 1], [], []>} : vector<16x8xf32>, vector<8x8xf32>, vector<16x8xf32> -> vector<16x8xf32>
    %cst_37 = arith.constant dense<0xFF800000> : vector<16xf32>
    %61 = vector.multi_reduction <maximumf>, %60, %cst_37 [1] : vector<16x8xf32> to vector<16xf32>
    %62 = vector.shape_cast %61 : vector<16xf32> to vector<16x1xf32>
    %63 = vector.broadcast %62 : vector<16x1xf32> to vector<16x8xf32>
    %64 = arith.subf %60, %63 : vector<16x8xf32>
    %65 = math.exp %64 : vector<16x8xf32>
    %cst_38 = arith.constant dense<0.000000e+00> : vector<16xf32>
    %66 = vector.multi_reduction <add>, %65, %cst_38 [1] : vector<16x8xf32> to vector<16xf32>
    %67 = vector.shape_cast %66 : vector<16xf32> to vector<16x1xf32>
    %68 = tpu.reciprocal %67 {approx = true} : vector<16x1xf32> -> vector<16x1xf32>
    %69 = vector.broadcast %68 : vector<16x1xf32> to vector<16x8xf32>
    %70 = arith.mulf %65, %69 : vector<16x8xf32>
    %c0_39 = arith.constant 0 : index
    %c24_40 = arith.constant 24 : index
    %71 = vector.load %arg12[%c0_39, %c24_40] : memref<8x32xf32, #tpu.memory_space<vmem>>, vector<8x8xf32>
    %cst_41 = arith.constant dense<0.000000e+00> : vector<16x8xf32>
    %72 = tpu.matmul %70, %71, %cst_41 {dimension_numbers = #tpu.dot_dimension_numbers<[1], [0], [0], [1], [0, 0, 1, 1], [], []>} : vector<16x8xf32>, vector<8x8xf32>, vector<16x8xf32> -> vector<16x8xf32>
    %c0_42 = arith.constant 0 : index
    %c24_43 = arith.constant 24 : index
    %73 = vector.load %arg13[%c0_42, %c24_43] : memref<16x32xf32, #tpu.memory_space<vmem>>, vector<16x8xf32>
    tpu.vector_store %arg13[%c0_42, %c24_43], %72 {strides = array<i32>} : memref<16x32xf32, #tpu.memory_space<vmem>>, vector<16x8xf32>,
    %c0_44 = arith.constant 0 : index
    %c0_45 = arith.constant 0 : index
    %74 = vector.load %arg13[%c0_44, %c0_45] : memref<16x32xf32, #tpu.memory_space<vmem>>, vector<16x32xf32>
    %c0_46 = arith.constant 0 : index
    %c0_47 = arith.constant 0 : index
    %75 = vector.load %arg8[%c0_46, %c0_47] : memref<32x32xf32, #tpu.memory_space<vmem>>, vector<32x32xf32>
    %cst_48 = arith.constant dense<0.000000e+00> : vector<16x32xf32>
    %76 = tpu.matmul %74, %75, %cst_48 {dimension_numbers = #tpu.dot_dimension_numbers<[1], [0], [0], [1], [0, 0, 1, 1], [], []>} : vector<16x32xf32>, vector<32x32xf32>, vector<16x32xf32> -> vector<16x32xf32>
    %c0_49 = arith.constant 0 : index
    %c0_50 = arith.constant 0 : index
    %77 = vector.load %arg9[%c0_49, %c0_50] : memref<1x32xf32, #tpu.memory_space<vmem>>, vector<1x32xf32>
    %78 = vector.broadcast %77 : vector<1x32xf32> to vector<16x32xf32>
    %79 = arith.addf %76, %78 : vector<16x32xf32>
    %c0_51 = arith.constant 0 : index
    %c0_52 = arith.constant 0 : index
    %c0_53 = arith.constant 0 : index
    %80 = vector.load %arg10[%c0_51, %c0_52, %c0_53] : memref<1x16x32xf32, #tpu.memory_space<vmem>>, vector<1x16x32xf32>
    %81 = vector.shape_cast %80 : vector<1x16x32xf32> to vector<16x32xf32>
    %82 = vector.shape_cast %79 : vector<16x32xf32> to vector<1x16x32xf32>
    tpu.vector_store %arg10[%c0_51, %c0_52, %c0_53], %82 {strides = array<i32>} : memref<1x16x32xf32, #tpu.memory_space<vmem>>, vector<1x16x32xf32>,
    return
  }
  func.func @transform_0(%arg0: i32, %arg1: i32) -> (i32, i32, i32) {
    %c0_i32 = arith.constant 0 : i32
    %c0_i32_0 = arith.constant 0 : i32
    return %arg0, %arg1, %c0_i32 : i32, i32, i32
  }
  func.func @transform_1(%arg0: i32, %arg1: i32) -> (i32, i32, i32) {
    %c0_i32 = arith.constant 0 : i32
    %c0_i32_0 = arith.constant 0 : i32
    %c0_i32_1 = arith.constant 0 : i32
    return %arg0, %c0_i32, %c0_i32_0 : i32, i32, i32
  }
  func.func @transform_2(%arg0: i32, %arg1: i32) -> (i32, i32) {
    %c0_i32 = arith.constant 0 : i32
    %c0_i32_0 = arith.constant 0 : i32
    %c0_i32_1 = arith.constant 0 : i32
    return %c0_i32, %c0_i32_0 : i32, i32
  }
  func.func @transform_3(%arg0: i32, %arg1: i32) -> (i32, i32) {
    %c0_i32 = arith.constant 0 : i32
    %c0_i32_0 = arith.constant 0 : i32
    %c0_i32_1 = arith.constant 0 : i32
    return %c0_i32, %c0_i32_0 : i32, i32
  }
  func.func @transform_4(%arg0: i32, %arg1: i32) -> (i32, i32) {
    %c0_i32 = arith.constant 0 : i32
    %c0_i32_0 = arith.constant 0 : i32
    %c0_i32_1 = arith.constant 0 : i32
    return %c0_i32, %c0_i32_0 : i32, i32
  }
  func.func @transform_5(%arg0: i32, %arg1: i32) -> (i32, i32) {
    %c0_i32 = arith.constant 0 : i32
    %c0_i32_0 = arith.constant 0 : i32
    %c0_i32_1 = arith.constant 0 : i32
    return %c0_i32, %c0_i32_0 : i32, i32
  }
  func.func @transform_6(%arg0: i32, %arg1: i32) -> (i32, i32) {
    %c0_i32 = arith.constant 0 : i32
    %c0_i32_0 = arith.constant 0 : i32
    %c0_i32_1 = arith.constant 0 : i32
    return %c0_i32, %c0_i32_0 : i32, i32
  }
  func.func @transform_7(%arg0: i32, %arg1: i32) -> (i32, i32) {
    %c0_i32 = arith.constant 0 : i32
    %c0_i32_0 = arith.constant 0 : i32
    %c0_i32_1 = arith.constant 0 : i32
    return %c0_i32, %c0_i32_0 : i32, i32
  }
  func.func @transform_8(%arg0: i32, %arg1: i32) -> (i32, i32, i32) {
    %c0_i32 = arith.constant 0 : i32
    %c0_i32_0 = arith.constant 0 : i32
    return %arg0, %arg1, %c0_i32 : i32, i32, i32
  }
}

</mosaic_0001>

<bundles_post_ra>
// kernel: cross_attention.1
= control target key start
LH: loop header
LB: loop body
LE: loop exit
PB: predicated region body
PF: predicated region fallthrough
CT: control target
= control target key end

     0   :  { %s1980_s0 = inlined_call_operand.hbm [shape: f32[2,16,32], index: 0, kind: input, shape index: {}]   ;;  %s1981_s1 = inlined_call_operand.hbm [shape: f32[2,8,24], index: 1, kind: input, shape index: {}]   ;;  %s1982_s2 = inlined_call_operand.hbm [shape: f32[32,32], index: 2, kind: input, shape index: {}]   ;;  %s1983_s3 = inlined_call_operand.vmem [shape: f32[1,32], index: 3, kind: input, shape index: {}]   ;;  %s1984_s4 = inlined_call_operand.hbm [shape: f32[24,64], index: 4, kind: input, shape index: {}]   ;;  %s1985_s5 = inlined_call_operand.hbm [shape: f32[1,64], index: 5, kind: input, shape index: {}]   ;;  %s1986_s6 = inlined_call_operand.hbm [shape: f32[32,32], index: 6, kind: input, shape index: {}]   ;;  %s1987_s7 = inlined_call_operand.vmem [shape: f32[1,32], index: 7, kind: input, shape index: {}]   ;;  %s1988_s8 = inlined_call_operand.hbm [shape: f32[2,16,32], index: 8, kind: output, shape index: {}]  }
   0x1   :  { %1995 = sst [smem:[#allocation28_spill]] %s1982_s2 }
   0x2   :  { %1996 = sst [smem:[#allocation29_spill]] %s1984_s4 }
   0x3   :  { %1997 = sst [smem:[#allocation30_spill]] %s1985_s5 }
   0x4   :  { %1998 = sst [smem:[#allocation31_spill]] %s1986_s6 }
   0x5   :  { %13 = vsyncpa [#allocation6], 0 }
   0x6   :  { %15 = vsyncpa [#allocation6 + $0x1], 0 }
   0x7   :  { %16 = vsyncpa [#allocation9], 0 }
   0x8   :  { %18 = vsyncpa [#allocation9 + $0x1], 0 }
   0x9   :  { %19 = vsyncpa [#allocation12], 0 }
   0xa   :  { %20 = vsyncpa [#allocation15], 0 }
   0xb   :  { %21 = vsyncpa [#allocation7], 0 }
   0xc   :  { %23 = vsyncpa [#allocation7 + $0x1], 0  ;;  %s1700_s27 = smov 0   ;;  %s1702_s28 = smov 0  }
   0xd   :  { %s1704_s29 = smov 0   ;;  %s1706_s30 = smov 0  }
   0xe   :  { %s1708_s9 = smov 0   ;;  %s1710_s10 = smov 0  }
   0xf LB: > { %1999 = sst [smem:[#allocation23_spill]] %s1619_s27  ;;  %s1731_s11 = sadd.s32 4294967295, %s1639_s10   ;;  %s1639_s10 = sphi %s1710_s10, %s29_s10   ;;  %s1635_s9 = sphi %s1708_s9, %s2024_s9   ;;  %s1631_s30 = sphi %s1706_s30, %s2023_s30   ;;  %s1627_s29 = sphi %s1704_s29, %s2019_s29   ;;  %s1623_s28 = sphi %s1702_s28, %s2022_s28   ;;  %s1619_s27 = sphi %s1700_s27, %s2021_s27  }
  0x10   : > { %2000 = sst [smem:[#allocation24_spill]] %s1627_s29  ;;  %s1158_s12 = sadd.s32 4294967294, %s1639_s10  }
  0x11   : > { %p63_p0 = scmp.ne.s32.totalorder %s1623_s28, %s1619_s27  ;;  %p64_p1 = scmp.eq.s32.totalorder %s1731_s11, 0 }
  0x12   : > { %p241_p2 = scmp.eq.s32.totalorder %s1731_s11, 1  ;;  %p247_p3 = scmp.eq.s32.totalorder %s1158_s12, 1 }
  0x13   : > { %p1740_p4 = por %p64_p1, %p63_p0  ;;  %p1159_p5 = scmp.ge.s32.totalorder %s1639_s10, 1 }
  0x14   : > { %p1745_p6 = por %p247_p3, %p63_p0  ;;  %p254_p7 = scmp.lt.s32.totalorder %s1639_s10, 3 }
  0x15   : > { %s2004_s2 = sld [smem:[#allocation28_spill]]  ;;  %s1641_s19 = smov [#allocation10]  }
  0x16   : > { %s2002_s14 = scalar_select %p1745_p6, 1, 0 }
  0x17   : > { %p1753_p8 = pnand %p1159_p5, %p254_p7  ;;  %s267_s20 = sshll.u32 %s1641_s19, 4  ;;  %s268_s20 = int_to_ptr.vmem [resolvable:$true] %s267_s20 }
  0x18   : > { %2003 = sst [smem:[#allocation25_spill]] %s2002_s14  ;;  %p1164_p11 = scmp.ge.s32.totalorder %s1639_s10, 2 }
  0x19   : > { %p1229_p9 = pneg %p1753_p8  ;;  %s2007_s4 = sld [smem:[#allocation29_spill]] }
  0x1a   : > { %s1989_s25 = smov 128   ;;  %s1990_s26 = smov 8  }
  0x1b   : > { %s265_s17 = sshll.u32 %s2004_s2, 4  ;;  %p1761_p10 = pnand %p1229_p9, %p64_p1  ;;  %s266_s17 = int_to_ptr.hbm [resolvable:$true] %s265_s17 }
  0x1c   : > { %s1644_s12 = smov [#allocation11]   ;;  %s2008_s5 = sld [smem:[#allocation30_spill]] }
  0x1d   : > { %1232 = dma.hbm_to_vmem [thread:$0]  (!%p1761_p10), %s266_s17, 512, %s268_s20, [#allocation9], %s1989_s25, %s1989_s25, %s1990_s26  }
  0x1e   : > { %s284_s15 = sshll.u32 %s1644_s12, 4  ;;  %s2009_s6 = sld [smem:[#allocation31_spill]]  ;;  %s285_s15 = int_to_ptr.vmem [resolvable:$true] %s284_s15 }
  0x1f   : > { %s282_s24 = sshll.u32 %s2007_s4, 4  ;;  %s1645_s23 = smov [#allocation13]   ;;  %s283_s24 = int_to_ptr.hbm [resolvable:$true] %s282_s24 }
  0x20   : > { %1235 = dma.hbm_to_vmem [thread:$0]  (!%p1761_p10), %s283_s24, 384, %s285_s15, [#allocation12], %s1989_s25, %s1989_s25, %s1990_s26  }
  0x21   : > { %s299_s12 = sshll.u32 %s1645_s23, 4  ;;  %s1646_s16 = smov [#allocation14]   ;;  %s300_s12 = int_to_ptr.vmem [resolvable:$true] %s299_s12 }
  0x22   : > { %s297_s2 = sshll.u32 %s2008_s5, 4  ;;  %s310_s19 = sshll.u32 %s1646_s16, 4  ;;  %s298_s2 = int_to_ptr.hbm [resolvable:$true] %s297_s2  ;;  %s311_s19 = int_to_ptr.vmem [resolvable:$true] %s310_s19 }
  0x23   : > { %1238 = dma.hbm_to_vmem [thread:$0]  (!%p1761_p10), %s298_s2, 16, %s300_s12, [#allocation12]  }
  0x24   : > { %s308_s22 = sshll.u32 %s2009_s6, 4  ;;  %s41_s24 = sadd.s32 1, %s1635_s9  ;;  %s309_s22 = int_to_ptr.hbm [resolvable:$true] %s308_s22 }
  0x25   : > { %1241 = dma.hbm_to_vmem [thread:$0]  (!%p1761_p10), %s309_s22, 512, %s311_s19, [#allocation15], %s1989_s25, %s1989_s25, %s1990_s26  }
  0x26   : > { %s50_s15 = sadd.s32 1, %s1627_s29  ;;  %p43_p12 = scmp.ge.s32.totalorder %s41_s24, 2 }
  0x27   : > { %p57_p13 = scmp.ne.s32.totalorder %s1627_s29, %s1623_s28  ;;  %p58_p0 = scmp.eq.s32.totalorder %s1639_s10, 0 }
  0x28   : > { %p1257_p3 = scmp.lt.s32.totalorder %s1639_s10, 2  ;;  %s2026_s24 = smov (%p43_p12, %s41_s24), 0 }
  0x29   : > { %2010 = sst [smem:[#allocation26_spill]] %s2026_s24  ;;  %p1800_p5 = por %p58_p0, %p57_p13 }
  0x2a   : > { %p1806_p7 = por %p241_p2, %p57_p13  ;;  %s45_s17 = ssub.s32 %s1635_s9, %s2026_s24 }
  0x2b   : > { %s327_s20 = sand.u32 1, %s1627_s29   ;;  %p48_p9 = scmp.eq.s32.totalorder %s45_s17, 0 }
  0x2c   : > { %s1165_s22 = sshll.u32 %s327_s20, 4  ;;  %s1204_s23 = sshll.u32 %s1635_s9, 4 }
  0x2d   : > { %s1815_s12 = scalar_select %p48_p9, %s1627_s29, %s50_s15  }
  0x2e   : > { %s338_s25 = scalar_lea.hbm %s1980_s0, %s1204_s23  ;;  %s331_s4 = scalar_lea.vmem [#allocation5], %s1165_s22 }
  0x2f   : > { %2013 = sst [smem:[#allocation27_spill]] %s1815_s12  ;;  %s339_s26 = sshll.u32 %s338_s25, 4  ;;  %s340_s26 = int_to_ptr.hbm [resolvable:$true] %s339_s26 }
  0x30   : > { %s341_s5 = sshll.u32 %s331_s4, 4  ;;  %p1243_p2 = pnand %p1257_p3, %p1800_p5  ;;  %s342_s5 = int_to_ptr.vmem [resolvable:$true] %s341_s5 }
  0x31   : > { %s351_s6 = sand.u32 1, %s1639_s10   ;;  %s1168_s24 = sshll.u32 %s327_s20, 3 }
  0x32   : > { %s328_s14 = scalar_lea.sflag [#allocation6], %s327_s20  ;;  %s2014_s17 = smov 8  }
  0x33   : > { %s2015_s27 = smov 128   ;;  %s1169_s15 = sshll.u32 %s1635_s9, 3 }
  0x34   : > { %1245 = dma.hbm_to_vmem [thread:$0]  (!%p1243_p2), %s340_s26, 256, %s342_s5, %s328_s14, %s2015_s27, %s2015_s27, %s2014_s17  }
  0x35   : > { %s355_s12 = scalar_lea.vmem [#allocation8], %s1168_s24  ;;  %s359_s25 = scalar_lea.hbm %s1981_s1, %s1169_s15 }
  0x36   : > { %s363_s29 = sshll.u32 %s355_s12, 4  ;;  %s361_s4 = sshll.u32 %s359_s25, 4  ;;  %s364_s29 = int_to_ptr.vmem [resolvable:$true] %s363_s29  ;;  %s362_s4 = int_to_ptr.hbm [resolvable:$true] %s361_s4 }
  0x37   : > { %s352_s2 = scalar_lea.sflag [#allocation9], %s351_s6  ;;  %372 = sbr.rel (%p1753_p8) target bundleno = 1573 (0x625), region = 52 }
  0x38   : > { %1248 = dma.hbm_to_vmem [thread:$0]  (!%p1243_p2), %s362_s4, 128, %s364_s29, %s352_s2  }
  0x39   : > { %s1835_s20 = sand.u32 (!%p1753_p8), 1, %s1623_s28  }
  0x3a   : > { %s1171_s5 = sshll.u32 (!%p1753_p8), %s1835_s20, 4  ;;  %s375_s27 = scalar_lea.sflag (!%p1753_p8), [#allocation6], %s1835_s20 }
  0x3b   : > { %s1841_s14 = scalar_lea.vmem (!%p1753_p8), [#allocation5], %s1171_s5 }
  0x3c   : > { %1594 = dma.done.wait (%p1740_p4), %s375_s27, 256  }
  0x3d   : > { %1596 = vsyncadd (%p1740_p4), %s375_s27, 4294967040  ;;  %s384_s6 = sand.u32 1, %s1731_s11   ;;  %s1172_s29 = sshll.u32 %s1835_s20, 3 }
  0x3e   : > { %s385_s18 = scalar_lea.sflag [#allocation9], %s384_s6  ;;  %s388_s26 = scalar_lea.vmem [#allocation8], %s1172_s29 }
  0x3f   : > { %1598 = dma.done.wait (%p1740_p4), %s385_s18, 128  }
  0x40   : > { %1600 = vsyncadd (%p1740_p4), %s385_s18, 4294967168 }
  0x41   : > { %1602 = dma.done.wait (%p64_p1), [#allocation9], 512  }
  0x42   : > { %1604 = vsyncadd (%p64_p1), [#allocation9], 4294966784 }
  0x43   : > { %1606 = dma.done.wait (%p64_p1), [#allocation12], 400  }
  0x44   : > { %1608 = vsyncadd (%p64_p1), [#allocation12], 4294966896 }
  0x45   : > { %1610 = dma.done.wait (%p64_p1), [#allocation15], 512  }
  0x46   : > { %1612 = vsyncadd (%p64_p1), [#allocation15], 4294966784  ;;  %v456_v0 = vld [vmem:[#allocation11 + $0x10] sm:$0xff]  ;;  %v455_v1 = vld [vmem:[#allocation11 + $0x8] sm:$0xff]  ;;  %vm461_vm0 = vcmask 195584   ;;  %vm489_vm1 = vcmask 261120  }
  0x47   : > { %478 = vmatpush.msra.mxu0 %v456_v0  ;;  %v454_v2 = vld [vmem:[#allocation11] sm:$0xff]  ;;  %v453_v3 = vld [vmem:[%s388_s26] sm:$0xff]  ;;  %v531_v6 = vld [vmem:[#allocation10 + $0x8] sm:$0xff]  ;;  %s1647_s11 = smov 96   ;;  %s1648_s22 = smov 120   ;;  %vm523_vm2 = vcmask 64512  }
  0x48   : > { %v533_v4 = vld [vmem:[#allocation10 + $0x18] sm:$0xff]  ;;  %v532_v5 = vld [vmem:[#allocation10 + $0x10] sm:$0xff]  ;;  %v530_v7 = vld [vmem:[#allocation10] sm:$0xff]  ;;  %s1649_s12 = smov 112   ;;  %s1650_s19 = smov 104   ;;  %vm749_vm3 = vcmask 130112  }
  0x49   : > { %479 = vmatpush.msra.mxu0 %v455_v1  ;;  %557 = vmatpush.msra.mxu1 %v533_v4  ;;  %v528_v8 = vld [vmem:[%s1841_s14] sm:$0xff]  ;;  %v529_v9 = vld [vmem:[%s1841_s14 + $0x8] sm:$0xff]  ;;  %s1651_s17 = smov 8   ;;  %s1652_s15 = smov 16   ;;  %vm848_vm4 = vcmask 195712   ;;  %vm947_vm5 = vcmask 261312  }
  0x4a   : > { %v1326_v10 = vld [vmem:[#allocation13] ss:$0 sm:$0xff]  ;;  %s1653_s16 = smov 24   ;;  %s1205_s4 = sshll.u32 %s1631_s30, 4 }
  0x4b   : > { %480 = vmatpush.msra.mxu0 %v454_v2  ;;  %558 = vmatpush.msra.mxu1 %v532_v5  ;;  %v1327_v15 = vld [vmem:[%s1983_s3] ss:$0 sm:$0xff]  ;;  %s446_s2 = scalar_lea.vmem [#allocation16], %s1171_s5  ;;  %s1005_s6 = scalar_lea.hbm %s1988_s8, %s1205_s4 }
  0x4c   : > { %1178 = vmatmul.msk.f32.vlgmr.msra.gmra.mxu0 %vm461_vm0, %v453_v3  ;;  %s1006_s29 = sshll.u32 %s446_s2, 4  ;;  %s1008_s18 = sshll.u32 %s1005_s6, 4  ;;  %s1007_s29 = int_to_ptr.vmem [resolvable:$true] %s1006_s29  ;;  %s1009_s18 = int_to_ptr.hbm [resolvable:$true] %s1008_s18 }
  0x4d   : > { %559 = vmatpush.msra.mxu1 %v531_v6  ;;  %s992_s26 = scalar_lea.sflag [#allocation7], %s1835_s20  ;;  %s1561_s24 = scalar_lea.hbm %s1988_s8, 32 }
  0x4f   : > { %560 = vmatpush.msra.mxu1 %v530_v7 }
  0x50   : > { %1179 = vmatmul.msk.f32.vlgmr.msra.gmra.mxu1 %vm489_vm1, %v528_v8 }
  0x58   : > { %1180 = vmatmul.msk.f32.gmra.mxu1 %vm489_vm1, %v529_v9 }
  0xc9   : > { %v482_v11 = vpop.f32.mrf.mxu0 }
  0xca   : > { %v483_v12 = vadd.f32 %v1326_v10, %v482_v11 }
  0xcc   : > { %486 = vrot.lane.b32.xlu2 %v483_v12, %s1647_s11  ;;  %491 = vxpose.xlu0.b32.start.end [1/1] (short) (narrow) %v483_v12, 32  ;;  %s1555_s11 = sshra.s32 %s1009_s18, 4  ;;  %s1556_s11 = int_to_ptr.hbm [resolvable:$true] %s1555_s11 }
  0xcd   : > { %v562_v16 = vpop.f32.mrf.mxu1  ;;  %s1557_s30 = scalar_lea.hbm %s1556_s11, 16  ;;  %p1562_p10 = scmp.lt.s32.totalorder %s1556_s11, %s1988_s8 }
  0xce   : > { %v563_v17 = vadd.f32 %v1327_v15, %v562_v16  ;;  %p1558_p1 = scmp.ne.s32.totalorder %s1556_s11, %s1557_s30  ;;  %p1563_p12 = scmp.lt.s32.totalorder %s1561_s24, %s1557_s30 }
  0xd0   : > { %654 = vrot.lane.b32.xlu1 %v563_v17, %s1648_s22  ;;  %p1559_p4 = pnand %p1558_p1, %p1806_p7  ;;  %p1564_p13 = por %p1563_p12, %p1562_p10 }
  0xd2   : > { %p1560_p8 = pneg %p1559_p4 }
  0xd4   : > { %p1565_p0 = pnand %p1564_p13, %p1560_p8 }
  0xd5   : > { %v565_v18 = vpop.f32.mrf.mxu1 }
  0xd6   : > { %v566_v19 = vadd.f32 %v1327_v15, %v565_v18 }
  0xd8   : > { %656 = vrot.lane.b32.xlu1 %v566_v19, %s1648_s22 }
 0x126   : > { %v487_v13 = vpop.permute.xlu2 %486 }
 0x127   : > { %490 = vst.msk [vmem:[#allocation3] sm:$0xff] %vm489_vm1, %v487_v13 }
 0x12e   : > { %v1870_v14 = vld [vmem:[#allocation3] sm:$0xff] }
 0x12f   : > { %643 = vmatpush.msra.mxu3 %v1870_v14 }
 0x142   : > { %v655_v24 = vpop.permute.xlu1 %654 }
 0x14a   : > { %v657_v25 = vpop.permute.xlu1 %656 }
 0x170   : > { %v507_v20 = vpop.trf.xlu0 }
 0x171   : > { %524 = vst.msk [vmem:[#allocation2] sm:$0xff] %vm523_vm2, %v507_v20 }
 0x178   : > { %v568_v21 = vld [vmem:[#allocation2] sm:$0xff]  ;;  %v508_v22 = vpop.trf.xlu0 }
 0x179   : > { %591 = vmatpush.msrb.mxu1 %v568_v21  ;;  %1206 = vmatpush.msra.mxu2 %v568_v21  ;;  %525 = vst.msk [vmem:[#allocation2 + $0x8] sm:$0xff] %vm523_vm2, %v508_v22 }
 0x17a   : > { %1181 = vmatmul.msk.f32.vlgmr.msrb.gmra.mxu1 %vm523_vm2, %v563_v17  ;;  %1182 = vmatmul.msk.f32.vlgmr.msra.gmra.mxu2 %vm523_vm2, %v566_v19 }
 0x180   : > { %v653_v23 = vld [vmem:[#allocation2 + $0x8] sm:$0xff]  ;;  %v509_v28 = vpop.trf.xlu0 }
 0x181   : > { %677 = vmatpush.msrb.mxu0 %v653_v23  ;;  %526 = vst.msk [vmem:[#allocation2 + $0x10] sm:$0xff] %vm523_vm2, %v509_v28 }
 0x182   : > { %1185 = vmatmul.msk.f32.vlgmr.msrb.gmra.mxu0 %vm523_vm2, %v655_v24 }
 0x188   : > { %v510_v31 = vpop.trf.xlu0  ;;  %v752_v32 = vld [vmem:[#allocation2 + $0x10] sm:$0xff] }
 0x189   : > { %527 = vst.msk [vmem:[#allocation2 + $0x18] sm:$0xff] %vm523_vm2, %v510_v31  ;;  %776 = vmatpush.msrb.mxu3 %v752_v32 }
 0x18a   : > { %1186 = vmatmul.msk.f32.gmra.mxu0 %vm523_vm2, %v657_v25 }
 0x190   : > { %v851_v33 = vld [vmem:[#allocation2 + $0x18] sm:$0xff] }
 0x191   : > { %875 = vmatpush.msra.mxu0 %v851_v33 }
 0x1f7   : > { %v593_v26 = vpop.f32.mrf.mxu1 }
 0x1f8   : > { %v599_v27 = vsel %vm523_vm2, %v593_v26, -inf }
 0x1f9   : > { %600 = vmax.xlane.f32.xlu0 %v599_v27 }
 0x1fd   : > { %v596_v29 = vpop.f32.mrf.mxu2 }
 0x1fe   : > { %v602_v30 = vsel %vm523_vm2, %v596_v29, -inf }
 0x1ff   : > { %603 = vmax.xlane.f32.xlu1 %v602_v30  ;;  %v679_v44 = vpop.f32.mrf.mxu0 }
 0x200   : > { %v685_v47 = vsel %vm523_vm2, %v679_v44, -inf }
 0x207   : > { %v682_v45 = vpop.f32.mrf.mxu0 }
 0x208   : > { %v688_v46 = vsel %vm523_vm2, %v682_v45, -inf }
 0x218   : > { %753 = vrot.lane.b32.xlu1 %v563_v17, %s1649_s12 }
 0x26c   : > { %v601_v34 = vpop.xlane.xlu0 %600 }
 0x26d   : > { %v605_v35 = vsub.f32 %v593_v26, %v601_v34 }
 0x26f   : > { %v607_v36 = vmul.f32 1.442695, %v605_v35 }
 0x271   : > { %1329 = vpow2.f32 %v607_v36 }
 0x272   : > { %v604_v37 = vpop.xlane.xlu1 %603 }
 0x273   : > { %v606_v38 = vsub.f32 %v596_v29, %v604_v37 }
 0x275   : > { %v609_v39 = vmul.f32 1.442695, %v606_v38 }
 0x277   : > { %v1330_v40 = vpop.eup %1329  ;;  %1331 = vpow2.f32 %v609_v39 }
 0x278   : > { %v611_v41 = vsel %vm523_vm2, %v1330_v40, 0.0 }
 0x279   : > { %612 = vadd.xlane.f32.xlu1 %v611_v41 }
 0x27d   : > { %v1332_v42 = vpop.eup %1331 }
 0x27e   : > { %v614_v43 = vsel %vm523_vm2, %v1332_v42, 0.0 }
 0x27f   : > { %615 = vadd.xlane.f32.xlu2 %v614_v43 }
 0x28a   : > { %v754_v48 = vpop.permute.xlu1 %753 }
 0x292   : > { %755 = vrot.lane.b32.xlu1 %v566_v19, %s1649_s12 }
 0x297   : > { %852 = vrot.lane.b32.xlu2 %v563_v17, %s1650_s19 }
 0x29a   : > { %854 = vrot.lane.b32.xlu1 %v566_v19, %s1650_s19 }
 0x2c0   : > { %689 = vmax.xlane.f32.xlu2 %v688_v46 }
 0x2c4   : > { %686 = vmax.xlane.f32.xlu1 %v685_v47 }
 0x2ec   : > { %v613_v49 = vpop.xlane.xlu1 %612 }
 0x2ed   : > { %1333 = vrcp.f32 %v613_v49 }
 0x2f2   : > { %v616_v50 = vpop.xlane.xlu2 %615 }
 0x2f3   : > { %v1334_v51 = vpop.eup %1333  ;;  %1335 = vrcp.f32 %v616_v50 }
 0x2f4   : > { %v619_v52 = vmul.f32 %v1334_v51, %v1330_v40 }
 0x2f6   : > { %1183 = vmatmul.msk.f32.vlgmr.msra.gmra.mxu3 %vm523_vm2, %v619_v52 }
 0x2f9   : > { %v1336_v53 = vpop.eup %1335 }
 0x2fa   : > { %v853_v54 = vpop.permute.xlu2 %852  ;;  %v620_v55 = vmul.f32 %v1336_v53, %v1332_v42 }
 0x2fb   : > { %1193 = vmatmul.msk.f32.vlgmr.msra.gmra.mxu0 %vm523_vm2, %v853_v54 }
 0x2fe   : > { %1184 = vmatmul.msk.f32.gmra.mxu3 %vm523_vm2, %v620_v55 }
 0x304   : > { %v756_v56 = vpop.permute.xlu1 %755 }
 0x306   : > { %1189 = vmatmul.msk.f32.vlgmr.msrb.gmra.mxu3 %vm523_vm2, %v754_v48 }
 0x30c   : > { %v855_v57 = vpop.permute.xlu1 %854 }
 0x30d   : > { %1194 = vmatmul.msk.f32.gmra.mxu0 %vm523_vm2, %v855_v57 }
 0x30e   : > { %1190 = vmatmul.msk.f32.gmra.mxu3 %vm523_vm2, %v756_v56 }
 0x333   : > { %v690_v0 = vpop.xlane.xlu2 %689 }
 0x334   : > { %v692_v2 = vsub.f32 %v682_v45, %v690_v0  ;;  %v955_v0 = vld [vmem:[#allocation14 + $0x18] sm:$0xff] }
 0x335   : > { %978 = vmatpush.msra.mxu3 %v955_v0 }
 0x336   : > { %v695_v7 = vmul.f32 1.442695, %v692_v2  ;;  %v953_v2 = vld [vmem:[#allocation14 + $0x8] sm:$0xff] }
 0x337   : > { %v687_v61 = vpop.xlane.xlu1 %686 }
 0x338   : > { %v691_v63 = vsub.f32 %v679_v44, %v687_v61 }
 0x33a   : > { %v693_v1 = vmul.f32 1.442695, %v691_v63 }
 0x33c   : > { %1337 = vpow2.f32 %v693_v1  ;;  %v954_v1 = vld [vmem:[#allocation14 + $0x10] sm:$0xff] }
 0x33d   : > { %1339 = vpow2.f32 %v695_v7  ;;  %979 = vmatpush.msra.mxu3 %v954_v1 }
 0x33f   : > { %980 = vmatpush.msra.mxu3 %v953_v2 }
 0x342   : > { %v1338_v8 = vpop.eup %1337 }
 0x343   : > { %v697_v11 = vsel %vm523_vm2, %v1338_v8, 0.0  ;;  %v1340_v12 = vpop.eup %1339 }
 0x344   : > { %v700_v13 = vsel %vm523_vm2, %v1340_v12, 0.0 }
 0x378   : > { %v877_v58 = vpop.f32.mrf.mxu0 }
 0x379   : > { %v645_v59 = vpop.f32.mrf.mxu3  ;;  %v883_v60 = vsel %vm523_vm2, %v877_v58, -inf }
 0x37a   : > { %651 = vst.msk [vmem:[#allocation4] sm:$0xff] %vm523_vm2, %v645_v59  ;;  %884 = vmax.xlane.f32.xlu2 %v883_v60 }
 0x381   : > { %v648_v62 = vpop.f32.mrf.mxu3 }
 0x382   : > { %652 = vst.msk [vmem:[#allocation4 + $0x8] sm:$0xff] %vm523_vm2, %v648_v62 }
 0x389   : > { %v778_v3 = vpop.f32.mrf.mxu3 }
 0x38a   : > { %v880_v4 = vpop.f32.mrf.mxu0  ;;  %v784_v5 = vsel %vm523_vm2, %v778_v3, -inf }
 0x38b   : > { %785 = vmax.xlane.f32.xlu1 %v784_v5  ;;  %v886_v6 = vsel %vm523_vm2, %v880_v4, -inf }
 0x38c   : > { %887 = vmax.xlane.f32.xlu2 %v886_v6 }
 0x391   : > { %v781_v9 = vpop.f32.mrf.mxu3 }
 0x392   : > { %v787_v10 = vsel %vm523_vm2, %v781_v9, -inf }
 0x393   : > { %788 = vmax.xlane.f32.xlu1 %v787_v10 }
 0x394   : > { %698 = vadd.xlane.f32.xlu2 %v697_v11 }
 0x39b   : > { %701 = vadd.xlane.f32.xlu1 %v700_v13 }
 0x3ac   : > { %709 = vrot.lane.b32.xlu2 %v1870_v14, %s1648_s22 }
 0x3b4   : > { %808 = vrot.lane.b32.xlu2 %v1870_v14, %s1649_s12 }
 0x3ed   : > { %v885_v15 = vpop.xlane.xlu2 %884 }
 0x3ee   : > { %v889_v16 = vsub.f32 %v877_v58, %v885_v15 }
 0x3f0   : > { %v891_v17 = vmul.f32 1.442695, %v889_v16 }
 0x3f2   : > { %1341 = vpow2.f32 %v891_v17 }
 0x3f8   : > { %v1342_v18 = vpop.eup %1341 }
 0x3f9   : > { %v895_v19 = vsel %vm523_vm2, %v1342_v18, 0.0 }
 0x3fa   : > { %896 = vadd.xlane.f32.xlu1 %v895_v19 }
 0x3fe   : > { %v786_v20 = vpop.xlane.xlu1 %785 }
 0x3ff   : > { %v790_v21 = vsub.f32 %v778_v3, %v786_v20  ;;  %v888_v22 = vpop.xlane.xlu2 %887  ;;  %v952_v3 = vld [vmem:[#allocation14] sm:$0xff] }
 0x400   : > { %v890_v23 = vsub.f32 %v880_v4, %v888_v22  ;;  %981 = vmatpush.msra.mxu3 %v952_v3 }
 0x401   : > { %v792_v24 = vmul.f32 1.442695, %v790_v21 }
 0x402   : > { %v893_v25 = vmul.f32 1.442695, %v890_v23 }
 0x403   : > { %1343 = vpow2.f32 %v792_v24 }
 0x404   : > { %1345 = vpow2.f32 %v893_v25 }
 0x406   : > { %v789_v26 = vpop.xlane.xlu1 %788 }
 0x407   : > { %v791_v27 = vsub.f32 %v781_v9, %v789_v26  ;;  %v699_v28 = vpop.xlane.xlu2 %698  ;;  %v1328_v9 = vld [vmem:[%s1987_s7] ss:$0 sm:$0xff] }
 0x408   : > { %1347 = vrcp.f32 %v699_v28 }
 0x409   : > { %v1344_v29 = vpop.eup %1343  ;;  %v794_v30 = vmul.f32 1.442695, %v791_v27 }
 0x40a   : > { %v1346_v31 = vpop.eup %1345  ;;  %v796_v32 = vsel %vm523_vm2, %v1344_v29, 0.0 }
 0x40b   : > { %1349 = vpow2.f32 %v794_v30  ;;  %797 = vadd.xlane.f32.xlu0 %v796_v32  ;;  %v898_v33 = vsel %vm523_vm2, %v1346_v31, 0.0 }
 0x40c   : > { %899 = vadd.xlane.f32.xlu1 %v898_v33 }
 0x40e   : > { %v1348_v34 = vpop.eup %1347  ;;  %v702_v35 = vpop.xlane.xlu1 %701 }
 0x40f   : > { %1351 = vrcp.f32 %v702_v35  ;;  %v710_v36 = vpop.permute.xlu2 %709  ;;  %v705_v37 = vmul.f32 %v1348_v34, %v1338_v8 }
 0x410   : > { %733 = vmatpush.msrb.mxu2 %v710_v36 }
 0x411   : > { %v1350_v38 = vpop.eup %1349  ;;  %1187 = vmatmul.msk.f32.vlgmr.msrb.gmra.mxu2 %vm523_vm2, %v705_v37 }
 0x412   : > { %v799_v39 = vsel %vm523_vm2, %v1350_v38, 0.0 }
 0x414   : > { %800 = vadd.xlane.f32.xlu1 %v799_v39 }
 0x415   : > { %v1352_v40 = vpop.eup %1351 }
 0x416   : > { %v706_v41 = vmul.f32 %v1352_v40, %v1340_v12 }
 0x417   : > { %v809_v42 = vpop.permute.xlu2 %808 }
 0x418   : > { %832 = vmatpush.msra.mxu1 %v809_v42 }
 0x419   : > { %1188 = vmatmul.msk.f32.gmra.mxu2 %vm523_vm2, %v706_v41 }
 0x41f   : > { %907 = vrot.lane.b32.xlu0 %v1870_v14, %s1650_s19 }
 0x46d   : > { %v897_v43 = vpop.xlane.xlu1 %896 }
 0x47e   : > { %v798_v44 = vpop.xlane.xlu0 %797 }
 0x47f   : > { %1353 = vrcp.f32 %v798_v44  ;;  %v900_v45 = vpop.xlane.xlu1 %899 }
 0x480   : > { %1355 = vrcp.f32 %v897_v43 }
 0x485   : > { %v1354_v46 = vpop.eup %1353 }
 0x486   : > { %v804_v47 = vmul.f32 %v1354_v46, %v1344_v29  ;;  %v1356_v49 = vpop.eup %1355 }
 0x487   : > { %v801_v48 = vpop.xlane.xlu1 %800  ;;  %v903_v52 = vmul.f32 %v1356_v49, %v1342_v18 }
 0x488   : > { %1357 = vrcp.f32 %v801_v48  ;;  %1191 = vmatmul.msk.f32.vlgmr.msra.gmra.mxu1 %vm523_vm2, %v804_v47 }
 0x489   : > { %1359 = vrcp.f32 %v900_v45 }
 0x48e   : > { %v1358_v50 = vpop.eup %1357 }
 0x48f   : > { %v805_v51 = vmul.f32 %v1358_v50, %v1350_v38  ;;  %v1360_v54 = vpop.eup %1359 }
 0x490   : > { %v904_v55 = vmul.f32 %v1360_v54, %v1346_v31 }
 0x491   : > { %v908_v53 = vpop.permute.xlu0 %907  ;;  %1192 = vmatmul.msk.f32.gmra.mxu1 %vm523_vm2, %v805_v51 }
 0x492   : > { %931 = vmatpush.msra.mxu2 %v908_v53 }
 0x493   : > { %1195 = vmatmul.msk.f32.vlgmr.msra.gmra.mxu2 %vm523_vm2, %v903_v52 }
 0x494   : > { %v735_v14 = vpop.f32.mrf.mxu2 }
 0x495   : > { %743 = vrot.lane.b32.xlu1 %v735_v14, %s1651_s17 }
 0x49b   : > { %1196 = vmatmul.msk.f32.gmra.mxu2 %vm523_vm2, %v904_v55 }
 0x49c   : > { %v738_v58 = vpop.f32.mrf.mxu2 }
 0x505   : > { %v834_v56 = vpop.f32.mrf.mxu1 }
 0x506   : > { %842 = vrot.lane.b32.xlu2 %v834_v56, %s1652_s15 }
 0x507   : > { %v744_v57 = vpop.permute.xlu1 %743 }
 0x508   : > { %750 = vst.msk [vmem:[#allocation4] sm:$0xff] %vm749_vm3, %v744_v57 }
 0x50e   : > { %745 = vrot.lane.b32.xlu2 %v738_v58, %s1651_s17  ;;  %v837_v60 = vpop.f32.mrf.mxu1 }
 0x516   : > { %v933_v59 = vpop.f32.mrf.mxu2 }
 0x517   : > { %941 = vrot.lane.b32.xlu0 %v933_v59, %s1653_s16 }
 0x51e   : > { %v936_v61 = vpop.f32.mrf.mxu2 }
 0x51f   : > { %943 = vrot.lane.b32.xlu2 %v936_v61, %s1653_s16  ;;  %844 = vrot.lane.b32.xlu0 %v837_v60, %s1652_s15 }
 0x560   : > { %v843_v62 = vpop.permute.xlu2 %842 }
 0x561   : > { %849 = vst.msk [vmem:[#allocation4] sm:$0xff] %vm848_vm4, %v843_v62 }
 0x568   : > { %v746_v63 = vpop.permute.xlu2 %745 }
 0x569   : > { %751 = vst.msk [vmem:[#allocation4 + $0x8] sm:$0xff] %vm749_vm3, %v746_v63 }
 0x579   : > { %v944_v7 = vpop.permute.xlu2 %943 }
 0x589   : > { %v942_v4 = vpop.permute.xlu0 %941 }
 0x58a   : > { %948 = vst.msk [vmem:[#allocation4] sm:$0xff] %vm947_vm5, %v942_v4 }
 0x591   : > { %v845_v5 = vpop.permute.xlu0 %844  ;;  %v950_v6 = vld [vmem:[#allocation4] sm:$0xff] }
 0x592   : > { %850 = vst.msk [vmem:[#allocation4 + $0x8] sm:$0xff] %vm848_vm4, %v845_v5  ;;  %1197 = vmatmul.msk.f32.vlgmr.msra.gmra.mxu3 %vm489_vm1, %v950_v6 }
 0x593   : > { %949 = vst.msk [vmem:[#allocation4 + $0x8] sm:$0xff] %vm947_vm5, %v944_v7 }
 0x59a   : > { %v951_v8 = vld [vmem:[#allocation4 + $0x8] sm:$0xff] }
 0x59b   : > { %1198 = vmatmul.msk.f32.gmra.mxu3 %vm489_vm1, %v951_v8 }
 0x615   : > { %v983_v10 = vpop.f32.mrf.mxu3 }
 0x616   : > { %v984_v11 = vadd.f32 %v1328_v9, %v983_v10 }
 0x618   : > { %989 = vst.msk [vmem:[%s446_s2] sm:$0xff] %vm489_vm1, %v984_v11 }
 0x61e   : > { %v986_v12 = vpop.f32.mrf.mxu3 }
 0x61f   : > { %v987_v13 = vadd.f32 %v1328_v9, %v986_v12 }
 0x621   : > { %990 = vst.msk [vmem:[%s446_s2 + $0x8] sm:$0xff] %vm489_vm1, %v987_v13 }
 0x622   : > { %1568 = shalt.err (!%p1565_p0)
}
 0x623   : > { %s1654_s20 = smov 128  }
 0x624   : > { %1227 = dma.vmem_to_hbm [thread:$0]  (%p1806_p7), %s1007_s29, 256, %s1009_s18, %s992_s26, %s1654_s20, %s1654_s20, %s1651_s17  }
 0x625 PF: > { %s2016_s19 = sld [smem:[#allocation23_spill]]  ;;  %p1250_p3 = pnand %p1164_p11, %p1745_p6 }
 0x627   : > { %p1251_p5 = pneg %p1250_p3 }
 0x62b   : > { %s1023_s16 = sand.u32 1, %s2016_s19  }
 0x62c   : > { %s1024_s23 = scalar_lea.sflag [#allocation7], %s1023_s16 }
 0x62d   : > { %1614 = dma.done.wait (%p1251_p5), %s1024_s23, 256  }
 0x62e   : > { %1616 = vsyncadd (%p1251_p5), %s1024_s23, 4294967040  ;;  %s29_s10 = sadd.s32 1, %s1639_s10   ;;  %s2018_s25 = sld [smem:[#allocation24_spill]] }
 0x62f   : > { %p26_p9 = scmp.ge.s32.totalorder %s29_s10, 4   ;;  %s2019_s29 = sld [smem:[#allocation27_spill]] }
 0x630   : > { %s2020_s21 = sld [smem:[#allocation26_spill]]  ;;  %s2021_s27 = smov %s1623_s28 }
 0x631   : > { %s2023_s30 = smov %s1635_s9 }
 0x632   :  { %28 = sbr.rel (!%p26_p9) target bundleno = 15 (0xf), region = 130 }
 0x634   : > { %s2022_s28 = smov %s2018_s25 }
 0x636   : > { %s2024_s9 = smov %s2020_s21 }
 0x637   :  { %1030 = vsyncpa [#allocation6], 1 }
 0x638   :  { %1032 = vsyncpa [#allocation6 + $0x1], 1 }
 0x639   :  { %1033 = vsyncpa [#allocation9], 1 }
 0x63a   :  { %1035 = vsyncpa [#allocation9 + $0x1], 1 }
 0x63b   :  { %1036 = vsyncpa [#allocation12], 1 }
 0x63c   :  { %1037 = vsyncpa [#allocation15], 1 }
 0x63d   :  { %1038 = vsyncpa [#allocation7], 1 }
 0x63e   :  { %1040 = vsyncpa [#allocation7 + $0x1], 1 }

</bundles_post_ra>
